<compile_context>
chip_gen: v7x
topology: tpu7x:2x2x1
jax: 0.10.0
libtpu: 0.0.40
codegen_flags: <defaults>
</compile_context>

<pallas_src>
import functools

import jax
import jax.numpy as jnp
from jax.experimental import pallas as pl
from jax.experimental.pallas import tpu as pltpu

STATE_SIZE = 4    # CartPole-v1 observation_space.shape[0]
ACTION_SIZE = 2   # CartPole-v1 action_space.n
HIDDEN = 32

# Packed parameter slab layout (float32, shape (34, 33)):
#   slab[0:32, 0:4]   = fc1.weight   (HIDDEN, STATE_SIZE)   (= W1^T)
#   slab[0:32, 4]     = fc1.bias     (HIDDEN,)
#   slab[32:34, 0:32] = fc2.weight   (ACTION_SIZE, HIDDEN)  (= W2^T)
#   slab[32:34, 32]   = fc2.bias     (ACTION_SIZE,)
SLAB_ROWS = HIDDEN + ACTION_SIZE          # 34
SLAB_COLS = max(STATE_SIZE, HIDDEN) + 1   # 33


def _round_up(x, m):
    return ((x + m - 1) // m) * m


def pack_params(w1, b1, w2, b2):
    """Pack PyTorch-layout params into one VMEM slab.  Call ONCE at init /
    after each optimizer step — not per forward call."""
    slab = jnp.zeros((SLAB_ROWS, SLAB_COLS), jnp.float32)
    slab = slab.at[:HIDDEN, :STATE_SIZE].set(w1.astype(jnp.float32))
    slab = slab.at[:HIDDEN, STATE_SIZE].set(b1.astype(jnp.float32))
    slab = slab.at[HIDDEN:, :HIDDEN].set(w2.astype(jnp.float32))
    slab = slab.at[HIDDEN:, HIDDEN].set(b2.astype(jnp.float32))
    return slab


def policy_kernel(x_ref, p_ref, out_ref):
    xt = x_ref[...]                                     # (STATE_SIZE, bm) f32
    p = p_ref[...]                                      # (34, 33) param slab
    w1t = p[:HIDDEN, :STATE_SIZE]                       # (32, 4)
    b1 = p[:HIDDEN, STATE_SIZE:STATE_SIZE + 1]          # (32, 1)
    w2t = p[HIDDEN:, :HIDDEN]                           # (2, 32)
    b2 = p[HIDDEN:, HIDDEN:HIDDEN + 1]                  # (2, 1)

    # fc1 + ReLU:  h^T = relu(W1^T @ x^T + b1)
    h = jnp.dot(w1t, xt, preferred_element_type=jnp.float32) + b1       # (32, bm)
    h = jnp.maximum(h, 0.0)

    # fc2:  logits^T = W2^T @ h^T + b2
    logits = jnp.dot(w2t, h, preferred_element_type=jnp.float32) + b2   # (2, bm)

    # 2-way softmax == sigmoid of the logit difference (no lane reductions).
    d = logits[1:2, :] - logits[0:1, :]                 # (1, bm)
    p_a1 = 1.0 / (1.0 + jnp.exp(-d))                    # exp -> EUP slot
    out_ref[...] = jnp.concatenate([1.0 - p_a1, p_a1], axis=0)          # (2, bm)


@functools.partial(jax.jit, static_argnames=("block_batch",))
def policy_forward_fm(params_slab, x_t, *, block_batch=4096):
    """Feature-major forward: x_t is (STATE_SIZE, B); returns (ACTION_SIZE, B)."""
    B = x_t.shape[1]

    # Lane-dense batch tile (multiple of 128).  When there's enough work, cap
    # the tile so the grid has >= 2 parallel steps (both v7x TensorCores used).
    bm = _round_up(B, 128)
    if B > 256:
        bm = min(bm, _round_up(pl.cdiv(B, 2), 128))
    bm = min(bm, block_batch)

    grid = (pl.cdiv(B, bm),)
    # NOTE: the ragged last block reads garbage lanes past B; columns are
    # independent and out-of-range lanes are masked on writeback -> harmless.
    return pl.pallas_call(
        policy_kernel,
        out_shape=jax.ShapeDtypeStruct((ACTION_SIZE, B), jnp.float32),
        grid=grid,
        in_specs=[
            pl.BlockSpec((STATE_SIZE, bm), lambda i: (0, i)),
            # Param slab: same block every step -> stays VMEM-resident.
            pl.BlockSpec((SLAB_ROWS, SLAB_COLS), lambda i: (0, 0)),
        ],
        out_specs=pl.BlockSpec((ACTION_SIZE, bm), lambda i: (0, i)),
        compiler_params=pltpu.CompilerParams(
            dimension_semantics=("parallel",)),   # shards batch across TCs on v7x
    )(x_t, params_slab)


def policy_forward(params_slab, x, *, block_batch=4096):
    """Batch-major convenience wrapper matching the PyTorch module:
    x is (B, STATE_SIZE) -> softmax probs (B, ACTION_SIZE).
    Hot rollout loops should keep x feature-major and call policy_forward_fm."""
    out_t = policy_forward_fm(params_slab, x.astype(jnp.float32).T,
                              block_batch=block_batch)
    return out_t.T


def init_params(key):
    """Deterministic init mimicking nn.Linear's U(-1/sqrt(fan_in), 1/sqrt(fan_in)).
    PyTorch layout: fc1.weight (32,4), fc1.bias (32,), fc2.weight (2,32), fc2.bias (2,)."""
    k1, k2, k3, k4 = jax.random.split(key, 4)
    bound1 = 1.0 / jnp.sqrt(jnp.float32(STATE_SIZE))
    bound2 = 1.0 / jnp.sqrt(jnp.float32(HIDDEN))
    w1 = jax.random.uniform(k1, (HIDDEN, STATE_SIZE), jnp.float32, -bound1, bound1)
    b1 = jax.random.uniform(k2, (HIDDEN,), jnp.float32, -bound1, bound1)
    w2 = jax.random.uniform(k3, (ACTION_SIZE, HIDDEN), jnp.float32, -bound2, bound2)
    b2 = jax.random.uniform(k4, (ACTION_SIZE,), jnp.float32, -bound2, bound2)
    return w1, b1, w2, b2


def reference_forward(x, w1, b1, w2, b2):
    h = jnp.maximum(x @ w1.T + b1, 0.0)
    logits = h @ w2.T + b2
    return jax.nn.softmax(logits, axis=-1)


if __name__ == "__main__":
    key = jax.random.PRNGKey(0)
    pkey, xkey, xkey2 = jax.random.split(key, 3)
    w1, b1, w2, b2 = init_params(pkey)
    params = pack_params(w1, b1, w2, b2)   # packed once, outside the hot path

    batch = 8
    x = jax.random.normal(xkey, (batch, STATE_SIZE), dtype=jnp.float32)
    out = jax.block_until_ready(policy_forward(params, x))
    ref = reference_forward(x, w1, b1, w2, b2)
    assert out.shape == (batch, ACTION_SIZE)
    assert jnp.allclose(jnp.sum(out, axis=-1), 1.0, atol=1e-5)
    assert jnp.allclose(out, ref, atol=1e-5, rtol=1e-5)

    # Larger, non-multiple batch exercises the ragged, multi-step parallel grid.
    x_big = jax.random.normal(xkey2, (1000, STATE_SIZE), dtype=jnp.float32)
    out_big = jax.block_until_ready(policy_forward(params, x_big))
    ref_big = reference_forward(x_big, w1, b1, w2, b2)
    assert out_big.shape == (1000, ACTION_SIZE)
    assert jnp.allclose(out_big, ref_big, atol=1e-5, rtol=1e-5)

    print("KERNEL_OK")
</pallas_src>

<mosaic_0001>
module attributes {stable_mosaic.version = 11 : i64} {
  func.func @policy_kernel(%arg0: i32, %arg1: memref<4x128xf32, #tpu.memory_space<vmem>>, %arg2: memref<34x33xf32, #tpu.memory_space<vmem>>, %arg3: memref<2x128xf32, #tpu.memory_space<vmem>>) attributes {dimension_semantics = [#tpu.dimension_semantics<parallel>], iteration_bounds = array<i64: 1>, scalar_prefetch = 0 : i64, scratch_operands = 0 : i64, tpu.core_type = #tpu.core_type<tc>, window_params = [{transform_indices = @transform_0, window_bounds = array<i64: 4, 128>}, {pipeline_mode = #tpu.pipeline_mode<synchronous>, transform_indices = @transform_1, window_bounds = array<i64: 34, 33>}, {transform_indices = @transform_2, window_bounds = array<i64: 2, 128>}]} {
    %c0 = arith.constant 0 : index
    %c0_0 = arith.constant 0 : index
    %0 = vector.load %arg1[%c0, %c0_0] : memref<4x128xf32, #tpu.memory_space<vmem>>, vector<4x128xf32>
    %c0_1 = arith.constant 0 : index
    %c0_2 = arith.constant 0 : index
    %1 = vector.load %arg2[%c0_1, %c0_2] : memref<34x33xf32, #tpu.memory_space<vmem>>, vector<34x33xf32>
    %2 = vector.extract_strided_slice %1 {offsets = [0, 0], sizes = [32, 4], strides = [1, 1]} : vector<34x33xf32> to vector<32x4xf32>
    %3 = vector.extract_strided_slice %1 {offsets = [0, 4], sizes = [32, 1], strides = [1, 1]} : vector<34x33xf32> to vector<32x1xf32>
    %4 = vector.extract_strided_slice %1 {offsets = [32, 0], sizes = [2, 32], strides = [1, 1]} : vector<34x33xf32> to vector<2x32xf32>
    %5 = vector.extract_strided_slice %1 {offsets = [32, 32], sizes = [2, 1], strides = [1, 1]} : vector<34x33xf32> to vector<2x1xf32>
    %cst = arith.constant dense<0.000000e+00> : vector<32x128xf32>
    %6 = tpu.matmul %2, %0, %cst {dimension_numbers = #tpu.dot_dimension_numbers<[1], [0], [0], [1], [0, 0, 1, 1], [], []>} : vector<32x4xf32>, vector<4x128xf32>, vector<32x128xf32> -> vector<32x128xf32>
    %7 = vector.broadcast %3 : vector<32x1xf32> to vector<32x128xf32>
    %8 = arith.addf %6, %7 : vector<32x128xf32>
    %cst_3 = arith.constant 0.000000e+00 : f32
    %9 = vector.broadcast %cst_3 : f32 to vector<32x128xf32>
    %10 = arith.maximumf %8, %9 : vector<32x128xf32>
    %cst_4 = arith.constant dense<0.000000e+00> : vector<2x128xf32>
    %11 = tpu.matmul %4, %10, %cst_4 {dimension_numbers = #tpu.dot_dimension_numbers<[1], [0], [0], [1], [0, 0, 1, 1], [], []>} : vector<2x32xf32>, vector<32x128xf32>, vector<2x128xf32> -> vector<2x128xf32>
    %12 = vector.broadcast %5 : vector<2x1xf32> to vector<2x128xf32>
    %13 = arith.addf %11, %12 : vector<2x128xf32>
    %14 = vector.extract_strided_slice %13 {offsets = [1, 0], sizes = [1, 128], strides = [1, 1]} : vector<2x128xf32> to vector<1x128xf32>
    %15 = vector.extract_strided_slice %13 {offsets = [0, 0], sizes = [1, 128], strides = [1, 1]} : vector<2x128xf32> to vector<1x128xf32>
    %16 = arith.subf %14, %15 : vector<1x128xf32>
    %cst_5 = arith.constant 0.000000e+00 : f32
    %17 = vector.broadcast %cst_5 : f32 to vector<1x128xf32>
    %18 = arith.subf %17, %16 : vector<1x128xf32>
    %19 = math.exp %18 : vector<1x128xf32>
    %cst_6 = arith.constant 1.000000e+00 : f32
    %20 = vector.broadcast %cst_6 : f32 to vector<1x128xf32>
    %21 = arith.addf %20, %19 : vector<1x128xf32>
    %cst_7 = arith.constant 1.000000e+00 : f32
    %22 = vector.broadcast %cst_7 : f32 to vector<1x128xf32>
    %23 = arith.divf %22, %21 : vector<1x128xf32>
    %cst_8 = arith.constant 1.000000e+00 : f32
    %24 = vector.broadcast %cst_8 : f32 to vector<1x128xf32>
    %25 = arith.subf %24, %23 : vector<1x128xf32>
    %26 = tpu.concatenate %25, %23 in 0 : vector<1x128xf32>, vector<1x128xf32> -> vector<2x128xf32>
    %c0_9 = arith.constant 0 : index
    %c0_10 = arith.constant 0 : index
    %27 = vector.load %arg3[%c0_9, %c0_10] : memref<2x128xf32, #tpu.memory_space<vmem>>, vector<2x128xf32>
    tpu.vector_store %arg3[%c0_9, %c0_10], %26 {strides = array<i32>} : memref<2x128xf32, #tpu.memory_space<vmem>>, vector<2x128xf32>,
    return
  }
  func.func @transform_0(%arg0: i32) -> (i32, i32) {
    %c0_i32 = arith.constant 0 : i32
    %c0_i32_0 = arith.constant 0 : i32
    return %c0_i32, %arg0 : i32, i32
  }
  func.func @transform_1(%arg0: i32) -> (i32, i32) {
    %c0_i32 = arith.constant 0 : i32
    %c0_i32_0 = arith.constant 0 : i32
    %c0_i32_1 = arith.constant 0 : i32
    return %c0_i32, %c0_i32_0 : i32, i32
  }
  func.func @transform_2(%arg0: i32) -> (i32, i32) {
    %c0_i32 = arith.constant 0 : i32
    %c0_i32_0 = arith.constant 0 : i32
    return %c0_i32, %arg0 : i32, i32
  }
}

</mosaic_0001>

<bundles_post_ra>
// kernel: policy_forward_fm.1
= control target key start
LH: loop header
LB: loop body
LE: loop exit
PB: predicated region body
PF: predicated region fallthrough
CT: control target
= control target key end

     0   :  { %7 = vsyncpa [#allocation3], 0  ;;  %s475_s0 = inlined_call_operand.hbm [shape: f32[4,8], index: 0, kind: input, shape index: {}]   ;;  %s476_s1 = inlined_call_operand.hbm [shape: f32[34,33], index: 1, kind: input, shape index: {}]   ;;  %s477_s2 = inlined_call_operand.hbm [shape: f32[2,8], index: 2, kind: output, shape index: {}]  }
   0x1   :  { %8 = vsyncpa [#allocation6], 0 }
   0x2   :  { %9 = vsyncpa [#allocation4], 0  ;;  %s407_s9 = smov [#allocation2]   ;;  %s408_s11 = smov [#allocation5]  }
   0x3   :  { %s16_s10 = sshll.u32 %s407_s9, 4  ;;  %s25_s12 = sshll.u32 %s408_s11, 4  ;;  %s17_s10 = int_to_ptr.vmem [resolvable:$true] %s16_s10  ;;  %s432_s12 = int_to_ptr.vmem [resolvable:$true] %s25_s12 }
   0x4   :  { %s335_s15 = scalar_lea.hbm %s475_s0, 64 }
   0x5   :  { %p336_p0 = scmp.ne.s32.totalorder %s475_s0, %s335_s15  ;;  %p339_p1 = scmp.lt.u32.totalorder %s335_s15, %s475_s0 }
   0x7   :  { %p341_p2 = pnand %p339_p1, %p336_p0 }
   0x9   :  { %344 = shalt.err (!%p341_p2)
}
   0xa   :  { %s345_s20 = scalar_lea.vmem %s17_s10, 64  ;;  %p350_p4 = scmp.lt.s32.totalorder %s17_s10, %s17_s10 }
   0xb   :  { %p346_p3 = scmp.ne.s32.totalorder %s17_s10, %s345_s20  ;;  %p351_p5 = scmp.lt.s32.totalorder %s345_s20, %s345_s20 }
   0xd   :  { %p352_p6 = por %p351_p5, %p350_p4 }
   0xf   :  { %p353_p7 = pnand %p352_p6, %p346_p3 }
  0x11   :  { %356 = shalt.err (!%p353_p7)
}
  0x12   :  { %19 = dma.hbm_to_vmem [thread:$0]  %s475_s0, 64, %s17_s10, [#allocation3]  }
  0x13   :  { %s357_s25 = scalar_lea.hbm %s476_s1, 640 }
  0x14   :  { %p358_p8 = scmp.ne.s32.totalorder %s476_s1, %s357_s25  ;;  %p361_p9 = scmp.lt.u32.totalorder %s357_s25, %s476_s1 }
  0x16   :  { %p363_p10 = pnand %p361_p9, %p358_p8 }
  0x18   :  { %366 = shalt.err (!%p363_p10)
}
  0x19   :  { %s367_s30 = scalar_lea.vmem %s432_s12, 640  ;;  %p372_p12 = scmp.lt.s32.totalorder %s432_s12, %s432_s12 }
  0x1a   :  { %p368_p11 = scmp.ne.s32.totalorder %s432_s12, %s367_s30  ;;  %p373_p13 = scmp.lt.s32.totalorder %s367_s30, %s367_s30 }
  0x1c   :  { %p374_p0 = por %p373_p13, %p372_p12 }
  0x1e   :  { %p375_p1 = pnand %p374_p0, %p368_p11 }
  0x20   :  { %378 = shalt.err (!%p375_p1)
}
  0x21   :  { %s409_s0 = smov 128   ;;  %s410_s3 = smov 8  }
  0x22   :  { %31 = dma.hbm_to_vmem [thread:$0]  %s476_s1, 640, %s432_s12, [#allocation6], %s409_s0, %s409_s0, %s410_s3  }
  0x23   :  { %401 = dma.done.wait [#allocation3], 64  }
  0x24   :  { %402 = vsyncadd [#allocation3], 4294967232 }
  0x25   :  { %403 = dma.done.wait [#allocation6], 640  }
  0x26   :  { %404 = vsyncadd [#allocation6], 4294966656  ;;  %v411_v0 = vmov 4   ;;  %vm73_vm0 = vcmask 1043456   ;;  %vm64_vm1 = vcmask 31744   ;;  %v39_v2 = vld [vmem:[#allocation5] sm:$0xff] }
  0x27   :  { %328 = vset.pattern.permute.xlu0 %v411_v0  ;;  %329 = vset.pattern.permute.xlu1 %v411_v0  ;;  %v38_v1 = vld [vmem:[#allocation2] sm:$0xf]  ;;  %v40_v3 = vld [vmem:[#allocation5 + $0x8] sm:$0xff]  ;;  %v41_v4 = vld [vmem:[#allocation5 + $0x10] sm:$0xff]  ;;  %v412_v6 = vmov 0.0|0.0   ;;  %vm413_vm2 = vmmov 0  }
  0x28   :  { %293 = vmatprep.subr.msk.mxu0 %vm73_vm0, %v38_v1  ;;  %295 = vmatprep.mubr.msk.f32.mxu0 %vm64_vm1, %v39_v2  ;;  %v42_v5 = vld [vmem:[#allocation5 + $0x18] sm:$0xff]  ;;  %v414_v7 = vmov 0.0   ;;  %v43_v8 = vld [vmem:[#allocation5 + $0x20] sm:$0x3]  ;;  %v415_v9 = vmov 32   ;;  %vm171_vm3 = vcmask 261120  }
  0x29   :  { %294 = vmatpush3.msk.msra.mxu0 %vm73_vm0, %v38_v1  ;;  %46 = vperm.xlu0 %328, %v39_v2   ;;  %s416_s1 = smov [#allocation7]   ;;  %vm258_vm4 = vcmask 1040384  }
  0x2a   :  { %296 = vmatmul.mubr.msk.f32.vlgmr.msra.gmra.mrb[0].mxu0 %vm64_vm1, %v40_v3  ;;  %56 = vperm.xlu1 %329, %v41_v4   ;;  %s267_s6 = sshll.u32 %s416_s1, 4  ;;  %s268_s6 = int_to_ptr.vmem [resolvable:$true] %s267_s6 }
  0x2b   :  { %298 = vmatprep.mubr.msk.f32.mxu0 %vm64_vm1, %v41_v4  ;;  %312 = vmatprep.subr.bf16.mxu1 %v412_v6  ;;  %s379_s7 = scalar_lea.vmem %s268_s6, 32  ;;  %p384_p3 = scmp.lt.s32.totalorder %s268_s6, %s268_s6 }
  0x2c   :  { %309 = vmatprep.mubr.msk.f32.mxu1 %vm413_vm2, %v414_v7  ;;  %p380_p2 = scmp.ne.s32.totalorder %s268_s6, %s379_s7  ;;  %p385_p4 = scmp.lt.s32.totalorder %s379_s7, %s379_s7 }
  0x2d   :  { %51 = vperm.xlu0 %328, %v40_v3  }
  0x2e   :  { %299 = vmatmul.mubr.msk.f32.gmra.mrb[2].mxu0 %vm64_vm1, %v42_v5  ;;  %61 = vperm.xlu1 %329, %v42_v5   ;;  %p386_p5 = por %p385_p4, %p384_p3 }
  0x30   :  { %p387_p6 = pnand %p386_p5, %p380_p2 }
  0x31   :  { %330 = vset.pattern.permute.xlu0 %v415_v9 }
  0x32   :  { %168 = vperm.xlu0 %330, %v43_v8  }
  0xa8   :  { %v47_v10 = vpop.permute.xlu0 %46 }
  0xa9   :  { %v57_v11 = vpop.permute.xlu1 %56 }
  0xac   :  { %v52_v12 = vpop.permute.xlu0 %51 }
  0xad   :  { %v62_v18 = vpop.permute.xlu1 %61 }
  0xb1   :  { %v169_v28 = vpop.permute.xlu0 %168 }
  0xfd   :  { %v297_v13 = vpop.f32.mrb[0].mxu0 }
  0xfe   :  { %v149_v14 = vadd.f32 %v297_v13, %v52_v12  ;;  %v143_v15 = vpop.f32.mrb[1].mxu0 }
  0xff   :  { %v144_v16 = vadd.f32 %v143_v15, %v47_v10 }
 0x100   :  { %v163_v17 = vmax.f32 %v149_v14, 0.0 }
 0x101   :  { %v162_v19 = vmax.f32 %v144_v16, 0.0  ;;  %v300_v20 = vpop.f32.mrb[2].mxu0 }
 0x102   :  { %v159_v21 = vadd.f32 %v300_v20, %v62_v18  ;;  %v153_v22 = vpop.f32.mrb[3].mxu0 }
 0x103   :  { %v154_v23 = vadd.f32 %v153_v22, %v57_v11  ;;  %v313_v24 = vpack.c.bf16 %v163_v17, %v162_v19 }
 0x104   :  { %v165_v25 = vmax.f32 %v159_v21, 0.0 }
 0x105   :  { %v164_v26 = vmax.f32 %v154_v23, 0.0  ;;  %314 = vmatpush3.bf16.msra.mxu1 %v313_v24 }
 0x106   :  { %315 = vmatprep.subr.bf16.mxu1 %v412_v6 }
 0x107   :  { %v316_v27 = vpack.c.bf16 %v165_v25, %v164_v26 }
 0x109   :  { %317 = vmatpush3.bf16.msra.mxu1 %v316_v27 }
 0x10c   :  { %310 = vmatmul.mubr.msk.f32.vlgmr.msra.gmra.mrb[0].mxu1 %vm171_vm3, %v43_v8 }
 0x1df   :  { %v240_v29 = vpop.f32.mrb[0].mxu1 }
 0x1e0   :  { %v241_v30 = vadd.f32 %v240_v29, %v169_v28  ;;  %v311_v31 = vpop.f32.mrb[1].mxu1 }
 0x1e2   :  { %v245_v32 = vrot.slane %v241_v30, 7 }
 0x1e4   :  { %v247_v33 = vsub.f32 %v241_v30, %v245_v32 }
 0x1e6   :  { %v248_v34 = vsub.f32 0.0, %v247_v33 }
 0x1e8   :  { %v249_v35 = vmul.f32 1.442695, %v248_v34 }
 0x1ea   :  { %331 = vpow2.f32 %v249_v35 }
 0x1f4   :  { %v332_v36 = vpop.eup %331 }
 0x1f5   :  { %v251_v37 = vadd.f32 1.0, %v332_v36 }
 0x1f7   :  { %333 = vrcp.f32 %v251_v37 }
 0x201   :  { %v334_v38 = vpop.eup %333 }
 0x202   :  { %v254_v39 = vsub.f32 1.0, %v334_v38 }
 0x204   :  { %v256_v40 = vrot.slane %v254_v39, 1 }
 0x206   :  { %v259_v41 = vsel %vm258_vm4, %v256_v40, %v334_v38 }
 0x207   :  { %260 = vst [vmem:[#allocation7] sm:$0x3] %v259_v41 }
 0x208   :  { %390 = shalt.err (!%p387_p6)
}
 0x209   :  { %s391_s10 = scalar_lea.hbm %s477_s2, 32 }
 0x20a   :  { %p392_p7 = scmp.ne.s32.totalorder %s477_s2, %s391_s10  ;;  %p395_p8 = scmp.lt.u32.totalorder %s391_s10, %s477_s2 }
 0x20c   :  { %p397_p9 = pnand %p395_p8, %p392_p7 }
 0x20e   :  { %400 = shalt.err (!%p397_p9)
}
 0x20f   :  { %270 = dma.vmem_to_hbm [thread:$0]  %s268_s6, 32, %s477_s2, [#allocation4]  }
 0x210   :  { %405 = dma.done.wait [#allocation4], 32  }
 0x211   :  { %406 = vsyncadd [#allocation4], 4294967264 }
 0x212   :  { %274 = vsyncpa [#allocation3], 1 }
 0x213   :  { %275 = vsyncpa [#allocation6], 1 }
 0x214   :  { %276 = vsyncpa [#allocation4], 1 }

</bundles_post_ra>
